<compile_context>
chip_gen: v7x
topology: tpu7x:2x2x1
jax: 0.10.0
libtpu: 0.0.40
codegen_flags: <defaults>
</compile_context>

<pallas_src>
import jax
import jax.numpy as jnp
from jax.experimental import pallas as pl
from jax.experimental.pallas import tpu as pltpu


def seal_kernel(x_ref, ahat_ref, amean_ref, sel_ref,
                w1_ref, c1_ref,
                wl_ref, wr_ref, c2_ref,
                w3_ref, c3_ref,
                w4_ref, c4_ref,
                out_ref):
    def mm(a, b):
        # Feed bf16 to the MXU, accumulate in f32.
        return jnp.dot(a.astype(jnp.bfloat16), b.astype(jnp.bfloat16),
                       preferred_element_type=jnp.float32)

    def lrelu(v):
        return jnp.where(v > 0, v, 0.01 * v)

    ahat = ahat_ref[...]

    # ---- GCNConv1 (+ BN1 folded into w1/c1) + leaky_relu (dropout == identity) ----
    h = lrelu(mm(ahat, mm(x_ref[...], w1_ref[...])) + c1_ref[...])           # (N, H)

    # ---- SAGEConv (+ BN2 folded): neighbor-mean branch + root branch ----
    agg = mm(amean_ref[...], h)                                              # (N, H)
    h = lrelu(mm(agg, wl_ref[...]) + mm(h, wr_ref[...]) + c2_ref[...])       # (N, H/2)

    # ---- GCNConv3 (+ BN3 folded) + leaky_relu ----
    h = lrelu(mm(ahat, mm(h, w3_ref[...])) + c3_ref[...])                    # (N, H/4)

    # ---- GCNConv4 ----
    h = mm(ahat, mm(h, w4_ref[...])) + c4_ref[...]                           # (N, Cout)

    # ---- fused global_add_pool + src/tgt gather: one (2L, N) selector matmul ----
    se = mm(sel_ref[...], h)                                                 # (2L, Cout)
    L = se.shape[0] // 2
    src = se[:L, :]
    tgt = se[L:, :]

    # Per-link dot products as diag(src @ tgt^T): keeps the result lane-dense (1, L)
    # with no in-kernel reshape/transpose of the reduction output.
    m = jax.lax.dot_general(src.astype(jnp.bfloat16), tgt.astype(jnp.bfloat16),
                            (((1,), (1,)), ((), ())),
                            preferred_element_type=jnp.float32)              # (L, L)
    eye = (jax.lax.broadcasted_iota(jnp.int32, (L, L), 0)
           == jax.lax.broadcasted_iota(jnp.int32, (L, L), 1))
    logit = jnp.sum(jnp.where(eye, m, 0.0), axis=0, keepdims=True)           # (1, L)

    # sigmoid via EUP: exp + approximate reciprocal
    out_ref[...] = pl.reciprocal(1.0 + jnp.exp(-logit), approx=True)


def seal_forward(x, a_hat, a_mean, sel, params):
    """params = (w1, c1, wl, wr, c2, w3, c3, w4, c4) with BN/bias already folded."""
    L = sel.shape[0] // 2
    bf = jnp.bfloat16
    w1, c1, wl, wr, c2, w3, c3, w4, c4 = params

    inputs = [x.astype(bf), a_hat.astype(bf), a_mean.astype(bf), sel.astype(bf),
              w1.astype(bf), c1.astype(jnp.float32),
              wl.astype(bf), wr.astype(bf), c2.astype(jnp.float32),
              w3.astype(bf), c3.astype(jnp.float32),
              w4.astype(bf), c4.astype(jnp.float32)]

    out = pl.pallas_call(
        seal_kernel,
        out_shape=jax.ShapeDtypeStruct((1, L), jnp.float32),
        in_specs=[pl.BlockSpec(memory_space=pltpu.MemorySpace.VMEM)] * len(inputs),
        out_specs=pl.BlockSpec(memory_space=pltpu.MemorySpace.VMEM),
    )(*inputs)
    return out[0, :]


def fold_bn(gamma, beta, mean, var, eps=1e-5):
    scale = gamma / jnp.sqrt(var + eps)
    shift = beta - mean * scale
    return scale[None, :], shift[None, :]


if __name__ == "__main__":
    # ---- problem sizes ----
    IN_C, HID, OUT_C = 8, 32, 8            # hidden//2 = 16, hidden//4 = 8
    H2, H4 = HID // 2, HID // 4
    G, NODES_PER_GRAPH = 8, 4
    N = G * NODES_PER_GRAPH                # 32 nodes
    L = 8                                  # number of links to score

    key = jax.random.PRNGKey(0)
    ks = jax.random.split(key, 20)

    # ---- graph structure: 8 disjoint 4-node rings (undirected, both directions) ----
    base = jnp.arange(NODES_PER_GRAPH)
    ring_src, ring_dst = base, jnp.roll(base, -1)
    srcs, dsts = [], []
    for g in range(G):
        off = g * NODES_PER_GRAPH
        srcs += [ring_src + off, ring_dst + off]
        dsts += [ring_dst + off, ring_src + off]
    edge_index = jnp.stack([jnp.concatenate(srcs), jnp.concatenate(dsts)])  # (2, 64)
    src_idx, dst_idx = edge_index[0], edge_index[1]

    batch = jnp.arange(N) // NODES_PER_GRAPH
    link_indices = jnp.array([[0, 1, 2, 3, 4, 5, 6, 7],
                              [1, 2, 3, 4, 5, 6, 7, 0]], dtype=jnp.int32)

    # ---- host-side glue: dense operators from edge_index / batch / link_indices ----
    A = jnp.zeros((N, N), jnp.float32).at[dst_idx, src_idx].add(1.0)
    A_tilde = A + jnp.eye(N, dtype=jnp.float32)
    deg = A_tilde.sum(axis=1)
    dinv = 1.0 / jnp.sqrt(deg)
    a_hat = A_tilde * dinv[:, None] * dinv[None, :]            # GCN-normalized adjacency

    in_deg = A.sum(axis=1)
    a_mean = A / jnp.maximum(in_deg, 1.0)[:, None]             # SAGE mean-aggregation matrix

    pool = (batch[None, :] == jnp.arange(G)[:, None]).astype(jnp.float32)   # (G, N)
    src_sel = jax.nn.one_hot(link_indices[0], G, dtype=jnp.float32)         # (L, G)
    tgt_sel = jax.nn.one_hot(link_indices[1], G, dtype=jnp.float32)         # (L, G)
    # fused pool + gather selector: (2L, N)
    sel = jnp.concatenate([src_sel, tgt_sel], axis=0) @ pool

    # ---- deterministic parameter init ----
    def w(k, shape):
        return (0.1 * jax.random.normal(k, shape)).astype(jnp.float32)

    w1 = w(ks[0], (IN_C, HID));  b1 = w(ks[1], (1, HID))
    wl = w(ks[2], (HID, H2));    bl = w(ks[3], (1, H2));   wr = w(ks[4], (HID, H2))
    w3 = w(ks[5], (H2, H4));     b3 = w(ks[6], (1, H4))
    w4 = w(ks[7], (H4, OUT_C));  b4 = w(ks[8], (1, OUT_C))

    def bn_params(k, c):
        k1, k2, k3, k4 = jax.random.split(k, 4)
        gamma = 1.0 + 0.1 * jax.random.normal(k1, (c,))
        beta = 0.1 * jax.random.normal(k2, (c,))
        mean = 0.1 * jax.random.normal(k3, (c,))
        var = 1.0 + 0.1 * jnp.abs(jax.random.normal(k4, (c,)))
        return fold_bn(gamma.astype(jnp.float32), beta.astype(jnp.float32),
                       mean.astype(jnp.float32), var.astype(jnp.float32))

    s1, t1 = bn_params(ks[9], HID)
    s2, t2 = bn_params(ks[10], H2)
    s3, t3 = bn_params(ks[11], H4)

    x = jax.random.normal(ks[12], (N, IN_C), dtype=jnp.float32)

    # ---- host-side algebraic folds: BN scale/shift + conv biases into weights ----
    w1f = w1 * s1;  c1 = b1 * s1 + t1                    # GCNConv1 + BN1
    wlf = wl * s2;  wrf = wr * s2;  c2 = bl * s2 + t2    # SAGEConv + BN2
    w3f = w3 * s3;  c3 = b3 * s3 + t3                    # GCNConv3 + BN3
    w4f = w4;       c4 = b4                              # GCNConv4 (no BN after)

    params = (w1f, c1, wlf, wrf, c2, w3f, c3, w4f, c4)

    link_pred = seal_forward(x, a_hat, a_mean, sel, params)
    jax.block_until_ready(link_pred)

    # ---- pure-JAX reference (unfolded math) for a correctness sanity check ----
    def lrelu(v):
        return jnp.where(v > 0, v, 0.01 * v)

    h = lrelu((a_hat @ (x @ w1) + b1) * s1 + t1)
    h = lrelu(((a_mean @ h) @ wl + bl + h @ wr) * s2 + t2)
    h = lrelu((a_hat @ (h @ w3) + b3) * s3 + t3)
    h = a_hat @ (h @ w4) + b4
    gg = pool @ h
    ref = jax.nn.sigmoid(jnp.sum((src_sel @ gg) * (tgt_sel @ gg), axis=1))

    assert link_pred.shape == (L,)
    assert bool(jnp.all(jnp.isfinite(link_pred)))
    assert bool(jnp.allclose(link_pred, ref, atol=5e-2)), (link_pred, ref)
    print("KERNEL_OK")
</pallas_src>

<mosaic_0001>
module attributes {stable_mosaic.version = 11 : i64} {
  func.func @seal_kernel(%arg0: memref<32x8xbf16, #tpu.memory_space<vmem>>, %arg1: memref<32x32xbf16, #tpu.memory_space<vmem>>, %arg2: memref<32x32xbf16, #tpu.memory_space<vmem>>, %arg3: memref<16x32xbf16, #tpu.memory_space<vmem>>, %arg4: memref<8x32xbf16, #tpu.memory_space<vmem>>, %arg5: memref<1x32xf32, #tpu.memory_space<vmem>>, %arg6: memref<32x16xbf16, #tpu.memory_space<vmem>>, %arg7: memref<32x16xbf16, #tpu.memory_space<vmem>>, %arg8: memref<1x16xf32, #tpu.memory_space<vmem>>, %arg9: memref<16x8xbf16, #tpu.memory_space<vmem>>, %arg10: memref<1x8xf32, #tpu.memory_space<vmem>>, %arg11: memref<8x8xbf16, #tpu.memory_space<vmem>>, %arg12: memref<1x8xf32, #tpu.memory_space<vmem>>, %arg13: memref<1x8xf32, #tpu.memory_space<vmem>>) attributes {dimension_semantics = [], scalar_prefetch = 0 : i64, scratch_operands = 0 : i64, tpu.core_type = #tpu.core_type<tc>} {
    %c0 = arith.constant 0 : index
    %c0_0 = arith.constant 0 : index
    %0 = vector.load %arg1[%c0, %c0_0] : memref<32x32xbf16, #tpu.memory_space<vmem>>, vector<32x32xbf16>
    %c0_1 = arith.constant 0 : index
    %c0_2 = arith.constant 0 : index
    %1 = vector.load %arg0[%c0_1, %c0_2] : memref<32x8xbf16, #tpu.memory_space<vmem>>, vector<32x8xbf16>
    %c0_3 = arith.constant 0 : index
    %c0_4 = arith.constant 0 : index
    %2 = vector.load %arg4[%c0_3, %c0_4] : memref<8x32xbf16, #tpu.memory_space<vmem>>, vector<8x32xbf16>
    %cst = arith.constant dense<0.000000e+00> : vector<32x32xf32>
    %3 = tpu.matmul %1, %2, %cst {dimension_numbers = #tpu.dot_dimension_numbers<[1], [0], [0], [1], [0, 0, 1, 1], [], []>} : vector<32x8xbf16>, vector<8x32xbf16>, vector<32x32xf32> -> vector<32x32xf32>
    %4 = arith.truncf %3 : vector<32x32xf32> to vector<32x32xbf16>
    %cst_5 = arith.constant dense<0.000000e+00> : vector<32x32xf32>
    %5 = tpu.matmul %0, %4, %cst_5 {dimension_numbers = #tpu.dot_dimension_numbers<[1], [0], [0], [1], [0, 0, 1, 1], [], []>} : vector<32x32xbf16>, vector<32x32xbf16>, vector<32x32xf32> -> vector<32x32xf32>
    %c0_6 = arith.constant 0 : index
    %c0_7 = arith.constant 0 : index
    %6 = vector.load %arg5[%c0_6, %c0_7] : memref<1x32xf32, #tpu.memory_space<vmem>>, vector<1x32xf32>
    %7 = vector.broadcast %6 : vector<1x32xf32> to vector<32x32xf32>
    %8 = arith.addf %5, %7 : vector<32x32xf32>
    %cst_8 = arith.constant 0.000000e+00 : f32
    %9 = vector.broadcast %cst_8 : f32 to vector<32x32xf32>
    %10 = arith.cmpf ogt, %8, %9 : vector<32x32xf32>
    %cst_9 = arith.constant 0.00999999977 : f32
    %11 = vector.broadcast %cst_9 : f32 to vector<32x32xf32>
    %12 = arith.mulf %11, %8 : vector<32x32xf32>
    %13 = arith.select %10, %8, %12 : vector<32x32xi1>, vector<32x32xf32>
    %c0_10 = arith.constant 0 : index
    %c0_11 = arith.constant 0 : index
    %14 = vector.load %arg2[%c0_10, %c0_11] : memref<32x32xbf16, #tpu.memory_space<vmem>>, vector<32x32xbf16>
    %15 = arith.truncf %13 : vector<32x32xf32> to vector<32x32xbf16>
    %cst_12 = arith.constant dense<0.000000e+00> : vector<32x32xf32>
    %16 = tpu.matmul %14, %15, %cst_12 {dimension_numbers = #tpu.dot_dimension_numbers<[1], [0], [0], [1], [0, 0, 1, 1], [], []>} : vector<32x32xbf16>, vector<32x32xbf16>, vector<32x32xf32> -> vector<32x32xf32>
    %c0_13 = arith.constant 0 : index
    %c0_14 = arith.constant 0 : index
    %17 = vector.load %arg6[%c0_13, %c0_14] : memref<32x16xbf16, #tpu.memory_space<vmem>>, vector<32x16xbf16>
    %18 = arith.truncf %16 : vector<32x32xf32> to vector<32x32xbf16>
    %cst_15 = arith.constant dense<0.000000e+00> : vector<32x16xf32>
    %19 = tpu.matmul %18, %17, %cst_15 {dimension_numbers = #tpu.dot_dimension_numbers<[1], [0], [0], [1], [0, 0, 1, 1], [], []>} : vector<32x32xbf16>, vector<32x16xbf16>, vector<32x16xf32> -> vector<32x16xf32>
    %c0_16 = arith.constant 0 : index
    %c0_17 = arith.constant 0 : index
    %20 = vector.load %arg7[%c0_16, %c0_17] : memref<32x16xbf16, #tpu.memory_space<vmem>>, vector<32x16xbf16>
    %21 = arith.truncf %13 : vector<32x32xf32> to vector<32x32xbf16>
    %cst_18 = arith.constant dense<0.000000e+00> : vector<32x16xf32>
    %22 = tpu.matmul %21, %20, %cst_18 {dimension_numbers = #tpu.dot_dimension_numbers<[1], [0], [0], [1], [0, 0, 1, 1], [], []>} : vector<32x32xbf16>, vector<32x16xbf16>, vector<32x16xf32> -> vector<32x16xf32>
    %23 = arith.addf %19, %22 : vector<32x16xf32>
    %c0_19 = arith.constant 0 : index
    %c0_20 = arith.constant 0 : index
    %24 = vector.load %arg8[%c0_19, %c0_20] : memref<1x16xf32, #tpu.memory_space<vmem>>, vector<1x16xf32>
    %25 = vector.broadcast %24 : vector<1x16xf32> to vector<32x16xf32>
    %26 = arith.addf %23, %25 : vector<32x16xf32>
    %cst_21 = arith.constant 0.000000e+00 : f32
    %27 = vector.broadcast %cst_21 : f32 to vector<32x16xf32>
    %28 = arith.cmpf ogt, %26, %27 : vector<32x16xf32>
    %cst_22 = arith.constant 0.00999999977 : f32
    %29 = vector.broadcast %cst_22 : f32 to vector<32x16xf32>
    %30 = arith.mulf %29, %26 : vector<32x16xf32>
    %31 = arith.select %28, %26, %30 : vector<32x16xi1>, vector<32x16xf32>
    %c0_23 = arith.constant 0 : index
    %c0_24 = arith.constant 0 : index
    %32 = vector.load %arg9[%c0_23, %c0_24] : memref<16x8xbf16, #tpu.memory_space<vmem>>, vector<16x8xbf16>
    %33 = arith.truncf %31 : vector<32x16xf32> to vector<32x16xbf16>
    %cst_25 = arith.constant dense<0.000000e+00> : vector<32x8xf32>
    %34 = tpu.matmul %33, %32, %cst_25 {dimension_numbers = #tpu.dot_dimension_numbers<[1], [0], [0], [1], [0, 0, 1, 1], [], []>} : vector<32x16xbf16>, vector<16x8xbf16>, vector<32x8xf32> -> vector<32x8xf32>
    %35 = arith.truncf %34 : vector<32x8xf32> to vector<32x8xbf16>
    %cst_26 = arith.constant dense<0.000000e+00> : vector<32x8xf32>
    %36 = tpu.matmul %0, %35, %cst_26 {dimension_numbers = #tpu.dot_dimension_numbers<[1], [0], [0], [1], [0, 0, 1, 1], [], []>} : vector<32x32xbf16>, vector<32x8xbf16>, vector<32x8xf32> -> vector<32x8xf32>
    %c0_27 = arith.constant 0 : index
    %c0_28 = arith.constant 0 : index
    %37 = vector.load %arg10[%c0_27, %c0_28] : memref<1x8xf32, #tpu.memory_space<vmem>>, vector<1x8xf32>
    %38 = vector.broadcast %37 : vector<1x8xf32> to vector<32x8xf32>
    %39 = arith.addf %36, %38 : vector<32x8xf32>
    %cst_29 = arith.constant 0.000000e+00 : f32
    %40 = vector.broadcast %cst_29 : f32 to vector<32x8xf32>
    %41 = arith.cmpf ogt, %39, %40 : vector<32x8xf32>
    %cst_30 = arith.constant 0.00999999977 : f32
    %42 = vector.broadcast %cst_30 : f32 to vector<32x8xf32>
    %43 = arith.mulf %42, %39 : vector<32x8xf32>
    %44 = arith.select %41, %39, %43 : vector<32x8xi1>, vector<32x8xf32>
    %c0_31 = arith.constant 0 : index
    %c0_32 = arith.constant 0 : index
    %45 = vector.load %arg11[%c0_31, %c0_32] : memref<8x8xbf16, #tpu.memory_space<vmem>>, vector<8x8xbf16>
    %46 = arith.truncf %44 : vector<32x8xf32> to vector<32x8xbf16>
    %cst_33 = arith.constant dense<0.000000e+00> : vector<32x8xf32>
    %47 = tpu.matmul %46, %45, %cst_33 {dimension_numbers = #tpu.dot_dimension_numbers<[1], [0], [0], [1], [0, 0, 1, 1], [], []>} : vector<32x8xbf16>, vector<8x8xbf16>, vector<32x8xf32> -> vector<32x8xf32>
    %48 = arith.truncf %47 : vector<32x8xf32> to vector<32x8xbf16>
    %cst_34 = arith.constant dense<0.000000e+00> : vector<32x8xf32>
    %49 = tpu.matmul %0, %48, %cst_34 {dimension_numbers = #tpu.dot_dimension_numbers<[1], [0], [0], [1], [0, 0, 1, 1], [], []>} : vector<32x32xbf16>, vector<32x8xbf16>, vector<32x8xf32> -> vector<32x8xf32>
    %c0_35 = arith.constant 0 : index
    %c0_36 = arith.constant 0 : index
    %50 = vector.load %arg12[%c0_35, %c0_36] : memref<1x8xf32, #tpu.memory_space<vmem>>, vector<1x8xf32>
    %51 = vector.broadcast %50 : vector<1x8xf32> to vector<32x8xf32>
    %52 = arith.addf %49, %51 : vector<32x8xf32>
    %c0_37 = arith.constant 0 : index
    %c0_38 = arith.constant 0 : index
    %53 = vector.load %arg3[%c0_37, %c0_38] : memref<16x32xbf16, #tpu.memory_space<vmem>>, vector<16x32xbf16>
    %54 = arith.truncf %52 : vector<32x8xf32> to vector<32x8xbf16>
    %cst_39 = arith.constant dense<0.000000e+00> : vector<16x8xf32>
    %55 = tpu.matmul %53, %54, %cst_39 {dimension_numbers = #tpu.dot_dimension_numbers<[1], [0], [0], [1], [0, 0, 1, 1], [], []>} : vector<16x32xbf16>, vector<32x8xbf16>, vector<16x8xf32> -> vector<16x8xf32>
    %56 = vector.extract_strided_slice %55 {offsets = [0, 0], sizes = [8, 8], strides = [1, 1]} : vector<16x8xf32> to vector<8x8xf32>
    %57 = vector.extract_strided_slice %55 {offsets = [8, 0], sizes = [8, 8], strides = [1, 1]} : vector<16x8xf32> to vector<8x8xf32>
    %58 = arith.truncf %56 : vector<8x8xf32> to vector<8x8xbf16>
    %59 = arith.truncf %57 : vector<8x8xf32> to vector<8x8xbf16>
    %cst_40 = arith.constant dense<0.000000e+00> : vector<8x8xf32>
    %60 = tpu.matmul %58, %59, %cst_40 {dimension_numbers = #tpu.dot_dimension_numbers<[1], [1], [0], [0], [0, 0, 1, 0], [], []>} : vector<8x8xbf16>, vector<8x8xbf16>, vector<8x8xf32> -> vector<8x8xf32>
    %61 = tpu.iota {dimensions = array<i32: 0>} : vector<8x8xi32>
    %62 = tpu.iota {dimensions = array<i32: 1>} : vector<8x8xi32>
    %63 = arith.cmpi eq, %61, %62 : vector<8x8xi32>
    %cst_41 = arith.constant 0.000000e+00 : f32
    %64 = vector.broadcast %cst_41 : f32 to vector<8x8xf32>
    %65 = arith.select %63, %60, %64 : vector<8x8xi1>, vector<8x8xf32>
    %cst_42 = arith.constant dense<0.000000e+00> : vector<8xf32>
    %66 = vector.multi_reduction <add>, %65, %cst_42 [0] : vector<8x8xf32> to vector<8xf32>
    %67 = vector.shape_cast %66 : vector<8xf32> to vector<1x8xf32>
    %cst_43 = arith.constant 0.000000e+00 : f32
    %68 = vector.broadcast %cst_43 : f32 to vector<1x8xf32>
    %69 = arith.subf %68, %67 : vector<1x8xf32>
    %70 = math.exp %69 : vector<1x8xf32>
    %cst_44 = arith.constant 1.000000e+00 : f32
    %71 = vector.broadcast %cst_44 : f32 to vector<1x8xf32>
    %72 = arith.addf %71, %70 : vector<1x8xf32>
    %73 = tpu.reciprocal %72 {approx = true} : vector<1x8xf32> -> vector<1x8xf32>
    %c0_45 = arith.constant 0 : index
    %c0_46 = arith.constant 0 : index
    %74 = vector.load %arg13[%c0_45, %c0_46] : memref<1x8xf32, #tpu.memory_space<vmem>>, vector<1x8xf32>
    tpu.vector_store %arg13[%c0_45, %c0_46], %73 {strides = array<i32>} : memref<1x8xf32, #tpu.memory_space<vmem>>, vector<1x8xf32>,
    return
  }
}

</mosaic_0001>

<bundles_post_ra>
// kernel: tpu_custom_call.1
= control target key start
LH: loop header
LB: loop body
LE: loop exit
PB: predicated region body
PF: predicated region fallthrough
CT: control target
= control target key end

     0   :  { %vm72_vm0 = vcmask 1043456   ;;  %vm65_vm1 = vcmask 64512   ;;  %s1216_s0 = inlined_call_operand.vmem [shape: bf16[32,8], index: 0, kind: input, shape index: {}]   ;;  %s1217_s1 = inlined_call_operand.vmem [shape: bf16[32,32], index: 1, kind: input, shape index: {}]   ;;  %s1218_s2 = inlined_call_operand.vmem [shape: bf16[32,32], index: 2, kind: input, shape index: {}]   ;;  %s1219_s3 = inlined_call_operand.vmem [shape: bf16[16,32], index: 3, kind: input, shape index: {}]   ;;  %s1220_s4 = inlined_call_operand.vmem [shape: bf16[8,32], index: 4, kind: input, shape index: {}]   ;;  %s1221_s5 = inlined_call_operand.vmem [shape: f32[1,32], index: 5, kind: input, shape index: {}]   ;;  %s1222_s6 = inlined_call_operand.vmem [shape: bf16[32,16], index: 6, kind: input, shape index: {}]   ;;  %s1223_s7 = inlined_call_operand.vmem [shape: bf16[32,16], index: 7, kind: input, shape index: {}]   ;;  %s1224_s8 = inlined_call_operand.vmem [shape: f32[1,16], index: 8, kind: input, shape index: {}]   ;;  %s1225_s9 = inlined_call_operand.vmem [shape: bf16[16,8], index: 9, kind: input, shape index: {}]   ;;  %s1226_s10 = inlined_call_operand.vmem [shape: f32[1,8], index: 10, kind: input, shape index: {}]   ;;  %s1227_s11 = inlined_call_operand.vmem [shape: bf16[8,8], index: 11, kind: input, shape index: {}]   ;;  %s1228_s12 = inlined_call_operand.vmem [shape: f32[1,8], index: 12, kind: input, shape index: {}]   ;;  %s1229_s13 = inlined_call_operand.hbm [shape: f32[1,8], index: 13, kind: output, shape index: {}]  }
   0x1   :  { %v54_v0 = vld [vmem:[%s1220_s4] sm:$0xf]  ;;  %v1004_v3 = vld [vmem:[%s1216_s0 + $0x8] sm:$0xff]  }
   0x2   :  { %v1003_v1 = vld [vmem:[%s1216_s0] sm:$0xff]   ;;  %998 = vmatprep.subr.msk.bf16.mxu0 %vm72_vm0, %v54_v0  ;;  %v74_v2 = vsel %vm72_vm0, %v54_v0, 0 }
   0x3   :  { %915 = vmatpush3.bf16.msra.mxu0 %v74_v2  ;;  %916 = vmatprep.mubr.msk.bf16.mxu0 %vm65_vm1, %v1003_v1 }
   0x6   :  { %917 = vmatmul.mubr.msk.bf16.vlgmr.msra.gmra.mrb[0].mxu0 %vm65_vm1, %v1004_v3 }
   0x7   :  { %18 = vsyncpa [#allocation3], 0  ;;  %v1132_v4 = vld [vmem:[%s1217_s1] sm:$0xff]   ;;  %vm144_vm2 = vcmask 261120   ;;  %v1139_v11 = vld [vmem:[%s1217_s1 + $0x8] sm:$0xff]   ;;  %vm460_vm11 = vcmask 130048  }
   0x8   :  { %924 = vmatprep.mubr.msk.bf16.mxu1 %vm144_vm2, %v1132_v4  ;;  %v1007_v12 = vld [vmem:[%s1223_s7] sm:$0xff]   ;;  %v1008_v13 = vld [vmem:[%s1223_s7 + $0x8] sm:$0xff]  }
   0x9   :  { %v1009_v14 = vld [vmem:[%s1218_s2] sm:$0xff]   ;;  %v1010_v35 = vld [vmem:[%s1218_s2 + $0x8] sm:$0xff]  }
   0xa   :  { %932 = vmatprep.mubr.msk.bf16.mxu0 %vm144_vm2, %v1009_v14  ;;  %v1011_v15 = vld [vmem:[%s1222_s6] sm:$0xff]   ;;  %v1012_v36 = vld [vmem:[%s1222_s6 + $0x8] sm:$0xff]  }
   0xb   :  { %v844_v16 = vld [vmem:[%s1221_s5] ss:$0 sm:$0xff] }
   0xc   :  { %v1013_v43 = vld [vmem:[%s1225_s9] sm:$0xff]  }
   0xd   :  { %v861_v44 = vld [vmem:[%s1224_s8] ss:$0 sm:$0xff] }
  0xd9   :  { %v918_v5 = vpop.f32.mrb[0].mxu0 }
  0xda   :  { %v110_v6 = vpop.f32.mrb[1].mxu0 }
  0xdb   :  { %v919_v7 = vpop.f32.mrb[2].mxu0 }
  0xdc   :  { %v126_v8 = vpack.c.bf16 %v919_v7, %v918_v5  ;;  %v113_v9 = vpop.f32.mrb[3].mxu0 }
  0xdd   :  { %v125_v10 = vpack.c.bf16 %v113_v9, %v110_v6  ;;  %v586_v6 = vld [vmem:[%s1227_s11] sm:$0xf] }
  0xde   :  { %v596_v7 = vsel %vm72_vm0, %v586_v6, 0 }
  0xdf   :  { %920 = vmatprep.subr.bf16.mxu1 %v125_v10 }
  0xe0   :  { %921 = vmatpush3.bf16.msra.mxu1 %v125_v10 }
  0xe1   :  { %922 = vmatprep.subr.bf16.mxu1 %v126_v8 }
  0xe4   :  { %923 = vmatpush3.bf16.msra.mxu1 %v126_v8  ;;  %v865_v8 = vld [vmem:[%s1226_s10] ss:$0 sm:$0xff] }
  0xe5   :  { %936 = vmatprep.subr.bf16.mxu1 %v1007_v12 }
  0xe7   :  { %925 = vmatmul.mubr.msk.bf16.vlgmr.msra.gmra.mrb[0].mxu1 %vm144_vm2, %v1139_v11 }
  0xe8   :  { %937 = vmatpush3.bf16.msra.mxu1 %v1007_v12 }
  0xe9   :  { %938 = vmatprep.subr.bf16.mxu1 %v1008_v13 }
  0xec   :  { %939 = vmatpush3.bf16.msra.mxu1 %v1008_v13 }
  0xed   :  { %944 = vmatprep.subr.bf16.mxu1 %v1011_v15 }
 0x1ba   :  { %v926_v17 = vpop.f32.mrb[0].mxu1 }
 0x1bb   :  { %v194_v18 = vadd.f32 %v926_v17, %v844_v16  ;;  %v185_v19 = vpop.f32.mrb[1].mxu1 }
 0x1bc   :  { %v186_v20 = vadd.f32 %v844_v16, %v185_v19  ;;  %v927_v21 = vpop.f32.mrb[2].mxu1 }
 0x1bd   :  { %v206_v22 = vmul.f32 0.01, %v194_v18  ;;  %v197_v23 = vadd.f32 %v927_v21, %v844_v16  ;;  %v188_v24 = vpop.f32.mrb[3].mxu1  ;;  %vm202_vm3 = vcmp.gt.f32.partialorder %v194_v18, 0.0 }
 0x1be   :  { %v204_v25 = vmul.f32 0.01, %v186_v20  ;;  %v189_v26 = vadd.f32 %v844_v16, %v188_v24  ;;  %vm200_vm4 = vcmp.gt.f32.partialorder %v186_v20, 0.0 }
 0x1bf   :  { %vm203_vm5 = vcmp.gt.f32.partialorder %v197_v23, 0.0  ;;  %v207_v27 = vmul.f32 0.01, %v197_v23  ;;  %v210_v29 = vsel %vm202_vm3, %v194_v18, %v206_v22 }
 0x1c0   :  { %vm201_vm6 = vcmp.gt.f32.partialorder %v189_v26, 0.0  ;;  %v205_v28 = vmul.f32 0.01, %v189_v26  ;;  %v208_v32 = vsel %vm200_vm4, %v186_v20, %v204_v25 }
 0x1c1   :  { %v211_v30 = vsel %vm203_vm5, %v197_v23, %v207_v27 }
 0x1c2   :  { %v217_v31 = vpack.c.bf16 %v211_v30, %v210_v29  ;;  %v209_v33 = vsel %vm201_vm6, %v189_v26, %v205_v28 }
 0x1c3   :  { %v216_v34 = vpack.c.bf16 %v209_v33, %v208_v32  ;;  %v1043_v33 = vmov 0.0  }
 0x1c5   :  { %928 = vmatprep.subr.bf16.mxu0 %v216_v34  ;;  %940 = vmatprep.mubr.msk.bf16.mxu1 %vm144_vm2, %v216_v34 }
 0x1c6   :  { %929 = vmatpush3.bf16.msra.mxu0 %v216_v34  ;;  %941 = vmatmul.mubr.msk.bf16.vlgmr.msra.gmra.mrb[4].mxu1 %vm144_vm2, %v217_v31 }
 0x1c7   :  { %930 = vmatprep.subr.bf16.mxu0 %v217_v31  ;;  %945 = vmatpush3.bf16.msra.mxu1 %v1011_v15 }
 0x1c8   :  { %946 = vmatprep.subr.bf16.mxu1 %v1012_v36 }
 0x1ca   :  { %931 = vmatpush3.bf16.msra.mxu0 %v217_v31 }
 0x1cb   :  { %947 = vmatpush3.bf16.msra.mxu1 %v1012_v36  ;;  %952 = vmatprep.subr.bf16.mxu0 %v1013_v43 }
 0x1cc   :  { %999 = vmatprep.subr.msk.bf16.mxu1 %vm72_vm0, %v586_v6  ;;  %vm1044_vm0 = vmmov 0  }
 0x1cd   :  { %933 = vmatmul.mubr.msk.bf16.vlgmr.msra.gmra.mrb[4].mxu0 %vm144_vm2, %v1010_v35  ;;  %v870_v35 = vld [vmem:[%s1228_s12] ss:$0 sm:$0xff] }
 0x1ce   :  { %953 = vmatpush3.bf16.msra.mxu0 %v1013_v43 }
 0x2a0   :  { %v934_v37 = vpop.f32.mrb[4].mxu0 }
 0x2a1   :  { %v268_v38 = vpop.f32.mrb[5].mxu0 }
 0x2a2   :  { %v935_v39 = vpop.f32.mrb[6].mxu0 }
 0x2a3   :  { %v288_v40 = vpack.c.bf16 %v935_v39, %v934_v37  ;;  %v271_v41 = vpop.f32.mrb[7].mxu0 }
 0x2a4   :  { %v287_v42 = vpack.c.bf16 %v271_v41, %v268_v38 }
 0x2a6   :  { %948 = vmatprep.mubr.msk.bf16.mxu1 %vm144_vm2, %v287_v42 }
 0x2a7   :  { %949 = vmatmul.mubr.msk.bf16.vlgmr.msra.gmra.mrb[4].mxu1 %vm144_vm2, %v288_v40 }
 0x2a8   :  { %967 = vmatpush3.bf16.msra.mxu1 %v596_v7 }
 0x2a9   :  { %980 = vmatprep.subr.bf16.mxu1 %v1043_v33 }
 0x37a   :  { %v950_v45 = vpop.f32.mrb[4].mxu1 }
 0x37b   :  { %v436_v46 = vadd.f32 %v950_v45, %v861_v44  ;;  %v412_v47 = vpop.f32.mrb[5].mxu1 }
 0x37c   :  { %v434_v48 = vadd.f32 %v861_v44, %v412_v47  ;;  %v951_v49 = vpop.f32.mrb[6].mxu1 }
 0x37d   :  { %v444_v50 = vmul.f32 0.01, %v436_v46  ;;  %v437_v51 = vadd.f32 %v951_v49, %v861_v44  ;;  %v415_v52 = vpop.f32.mrb[7].mxu1  ;;  %vm440_vm7 = vcmp.gt.f32.partialorder %v436_v46, 0.0 }
 0x37e   :  { %v442_v53 = vmul.f32 0.01, %v434_v48  ;;  %v435_v54 = vadd.f32 %v861_v44, %v415_v52  ;;  %vm438_vm8 = vcmp.gt.f32.partialorder %v434_v48, 0.0  ;;  %v1014_v44 = vld [vmem:[%s1219_s3] sm:$0xff]   ;;  %v806_v52 = vlaneseq  ;;  %s1045_s3 = smov [#allocation2]  }
 0x37f   :  { %vm441_vm9 = vcmp.gt.f32.partialorder %v437_v51, 0.0  ;;  %v445_v55 = vmul.f32 0.01, %v437_v51  ;;  %v448_v57 = vsel %vm440_vm7, %v436_v46, %v444_v50  ;;  %s832_s12 = sshll.u32 %s1045_s3, 4  ;;  %s833_s12 = int_to_ptr.vmem [resolvable:$true] %s832_s12 }
 0x380   :  { %vm439_vm10 = vcmp.gt.f32.partialorder %v435_v54, 0.0  ;;  %v443_v56 = vmul.f32 0.01, %v435_v54  ;;  %v446_v59 = vsel %vm438_vm8, %v434_v48, %v442_v53  ;;  %v807_v53 = vshrl.u32 %v806_v52, 7  ;;  %s1019_s0 = scalar_lea.vmem %s833_s12, 16  ;;  %s1023_s15 = scalar_lea.vmem %s833_s12, 32 }
 0x381   :  { %v449_v58 = vsel %vm441_vm9, %v437_v51, %v445_v55  ;;  %p1020_p0 = scmp.ne.s32.totalorder %s833_s12, %s1019_s0  ;;  %p1024_p1 = scmp.lt.s32.totalorder %s833_s12, %s833_s12 }
 0x382   :  { %v453_v60 = vpack.c.bf16 %v449_v58, %v448_v57  ;;  %v447_v61 = vsel %vm439_vm10, %v435_v54, %v443_v56  ;;  %v809_v54 = vand.u32 127, %v806_v52  ;;  %p1025_p2 = scmp.lt.s32.totalorder %s1023_s15, %s1019_s0 }
 0x383   :  { %v452_v62 = vpack.c.bf16 %v447_v61, %v446_v59 }
 0x384   :  { %vm810_vm3 = vcmp.eq.s32.totalorder %v807_v53, %v809_v54  ;;  %p1026_p3 = por %p1025_p2, %p1024_p1 }
 0x385   :  { %954 = vmatprep.mubr.msk.bf16.mxu0 %vm460_vm11, %v452_v62 }
 0x386   :  { %955 = vmatmul.mubr.msk.bf16.vlgmr.msra.gmra.mrb[8].mxu0 %vm460_vm11, %v453_v60  ;;  %p1027_p4 = pnand %p1026_p3, %p1020_p0 }
 0x387   :  { %962 = vmatprep.mubr.msk.bf16.mxu0 %vm144_vm2, %v1132_v4 }
 0x459   :  { %v956_v63 = vpop.f32.mrb[8].mxu0 }
 0x45a   :  { %v501_v0 = vpop.f32.mrb[9].mxu0 }
 0x45b   :  { %v957_v1 = vpop.f32.mrb[10].mxu0 }
 0x45c   :  { %v517_v2 = vpack.c.bf16 %v957_v1, %v956_v63  ;;  %v504_v3 = vpop.f32.mrb[11].mxu0 }
 0x45d   :  { %v516_v5 = vpack.c.bf16 %v504_v3, %v501_v0 }
 0x45f   :  { %958 = vmatprep.subr.bf16.mxu0 %v516_v5 }
 0x460   :  { %959 = vmatpush3.bf16.msra.mxu0 %v516_v5 }
 0x461   :  { %960 = vmatprep.subr.bf16.mxu0 %v517_v2 }
 0x464   :  { %961 = vmatpush3.bf16.msra.mxu0 %v517_v2 }
 0x467   :  { %963 = vmatmul.mubr.msk.bf16.vlgmr.msra.gmra.mrb[12].mxu0 %vm144_vm2, %v1139_v11 }
 0x468   :  { %976 = vmatprep.mubr.msk.bf16.mxu0 %vm144_vm2, %v1132_v4 }
 0x53a   :  { %v964_v9 = vpop.f32.mrb[12].mxu0 }
 0x53b   :  { %v568_v10 = vadd.f32 %v964_v9, %v865_v8  ;;  %v559_v12 = vpop.f32.mrb[13].mxu0 }
 0x53c   :  { %v560_v13 = vadd.f32 %v865_v8, %v559_v12  ;;  %v965_v14 = vpop.f32.mrb[14].mxu0 }
 0x53d   :  { %v580_v15 = vmul.f32 0.01, %v568_v10  ;;  %v571_v4 = vadd.f32 %v965_v14, %v865_v8  ;;  %v562_v16 = vpop.f32.mrb[15].mxu0  ;;  %vm576_vm12 = vcmp.gt.f32.partialorder %v568_v10, 0.0 }
 0x53e   :  { %v578_v17 = vmul.f32 0.01, %v560_v13  ;;  %v563_v18 = vadd.f32 %v865_v8, %v562_v16  ;;  %vm574_vm13 = vcmp.gt.f32.partialorder %v560_v13, 0.0 }
 0x53f   :  { %vm577_vm14 = vcmp.gt.f32.partialorder %v571_v4, 0.0  ;;  %v581_v19 = vmul.f32 0.01, %v571_v4  ;;  %v584_v21 = vsel %vm576_vm12, %v568_v10, %v580_v15 }
 0x540   :  { %vm575_vm15 = vcmp.gt.f32.partialorder %v563_v18, 0.0  ;;  %v579_v20 = vmul.f32 0.01, %v563_v18  ;;  %v582_v23 = vsel %vm574_vm13, %v560_v13, %v578_v17 }
 0x541   :  { %v585_v22 = vsel %vm577_vm14, %v571_v4, %v581_v19 }
 0x542   :  { %v588_v24 = vpack.c.bf16 %v585_v22, %v584_v21  ;;  %v583_v25 = vsel %vm575_vm15, %v563_v18, %v579_v20 }
 0x543   :  { %v587_v26 = vpack.c.bf16 %v583_v25, %v582_v23 }
 0x545   :  { %968 = vmatprep.mubr.msk.bf16.mxu1 %vm65_vm1, %v587_v26 }
 0x546   :  { %969 = vmatmul.mubr.msk.bf16.vlgmr.msra.gmra.mrb[8].mxu1 %vm65_vm1, %v588_v24 }
 0x547   :  { %984 = vmatprep.mubr.msk.bf16.mxu1 %vm1044_vm0, %v1043_v33 }
 0x619   :  { %v970_v27 = vpop.f32.mrb[8].mxu1 }
 0x61a   :  { %v632_v28 = vpop.f32.mrb[9].mxu1 }
 0x61b   :  { %v971_v29 = vpop.f32.mrb[10].mxu1 }
 0x61c   :  { %v648_v30 = vpack.c.bf16 %v971_v29, %v970_v27  ;;  %v635_v31 = vpop.f32.mrb[11].mxu1 }
 0x61d   :  { %v647_v32 = vpack.c.bf16 %v635_v31, %v632_v28 }
 0x61f   :  { %972 = vmatprep.subr.bf16.mxu0 %v647_v32 }
 0x620   :  { %973 = vmatpush3.bf16.msra.mxu0 %v647_v32 }
 0x621   :  { %974 = vmatprep.subr.bf16.mxu0 %v648_v30 }
 0x624   :  { %975 = vmatpush3.bf16.msra.mxu0 %v648_v30 }
 0x625   :  { %988 = vmatprep.subr.bf16.mxu0 %v1043_v33 }
 0x627   :  { %977 = vmatmul.mubr.msk.bf16.vlgmr.msra.gmra.mrb[16].mxu0 %vm144_vm2, %v1139_v11 }
 0x628   :  { %990 = vmatprep.mubr.msk.bf16.mxu0 %vm1044_vm0, %v1043_v33 }
 0x6fa   :  { %v978_v34 = vpop.f32.mrb[16].mxu0 }
 0x6fb   :  { %v690_v36 = vpop.f32.mrb[17].mxu0  ;;  %v699_v38 = vadd.f32 %v978_v34, %v870_v35 }
 0x6fc   :  { %v979_v37 = vpop.f32.mrb[18].mxu0  ;;  %v691_v41 = vadd.f32 %v870_v35, %v690_v36 }
 0x6fd   :  { %v702_v39 = vadd.f32 %v979_v37, %v870_v35  ;;  %v693_v40 = vpop.f32.mrb[19].mxu0 }
 0x6fe   :  { %v694_v42 = vadd.f32 %v870_v35, %v693_v40 }
 0x6ff   :  { %v708_v43 = vpack.c.bf16 %v702_v39, %v699_v38 }
 0x700   :  { %v707_v11 = vpack.c.bf16 %v694_v42, %v691_v41 }
 0x702   :  { %981 = vmatpush3.bf16.msra.mxu1 %v707_v11 }
 0x703   :  { %982 = vmatprep.subr.bf16.mxu1 %v1043_v33 }
 0x706   :  { %983 = vmatpush3.bf16.msra.mxu1 %v708_v43 }
 0x709   :  { %985 = vmatmul.mubr.msk.bf16.vlgmr.msra.gmra.mrb[12].mxu1 %vm144_vm2, %v1014_v44  ;;  %vm824_vm2 = vcmask 57344  }
 0x7dc   :  { %v751_v45 = vpop.f32.mrb[12].mxu1 }
 0x7dd   :  { %v986_v46 = vpop.f32.mrb[13].mxu1  ;;  %v758_v51 = vpack.c.bf16 %v751_v45, %v751_v45 }
 0x7de   :  { %v754_v47 = vpop.f32.mrb[14].mxu1 }
 0x7df   :  { %v759_v48 = vpack.c.bf16 %v754_v47, %v754_v47  ;;  %v987_v49 = vpop.f32.mrb[15].mxu1 }
 0x7e1   :  { %v764_v50 = vsel %vm65_vm1, %v759_v48, 0 }
 0x7e2   :  { %989 = vmatpush3.bf16.xpose.msra.mxu0 %v764_v50 }
 0x7e9   :  { %991 = vmatmul.mubr.msk.bf16.vlgmr.msra.gmra.mrb[20].mxu0 %vm65_vm1, %v758_v51 }
 0x8bc   :  { %v800_v55 = vpop.f32.mrb[20].mxu0 }
 0x8bd   :  { %v811_v56 = vsel %vm810_vm3, %v800_v55, 0.0  ;;  %v992_v57 = vpop.f32.mrb[21].mxu0 }
 0x8be   :  { %v812_v58 = vsel %vm65_vm1, %v811_v56, 0.0  ;;  %v803_v59 = vpop.f32.mrb[22].mxu0 }
 0x8bf   :  { %v813_v60 = vrot.slane %v812_v58, 4  ;;  %v993_v61 = vpop.f32.mrb[23].mxu0 }
 0x8c1   :  { %v814_v62 = vadd.f32 %v813_v60, %v812_v58 }
 0x8c3   :  { %v815_v63 = vrot.slane %v814_v62, 2 }
 0x8c5   :  { %v816_v0 = vadd.f32 %v815_v63, %v814_v62 }
 0x8c7   :  { %v817_v1 = vrot.slane %v816_v0, 1 }
 0x8c9   :  { %v818_v2 = vadd.f32 %v817_v1, %v816_v0 }
 0x8cb   :  { %v819_v3 = vsub.f32 0.0, %v818_v2 }
 0x8cd   :  { %v820_v5 = vmul.f32 1.442695, %v819_v3 }
 0x8cf   :  { %1015 = vpow2.f32 %v820_v5 }
 0x8d9   :  { %v1016_v6 = vpop.eup %1015 }
 0x8da   :  { %v822_v7 = vadd.f32 1.0, %v1016_v6 }
 0x8dc   :  { %1017 = vrcp.f32 %v822_v7 }
 0x8e6   :  { %v1018_v8 = vpop.eup %1017 }
 0x8e7   :  { %825 = vst.msk [vmem:[#allocation2] sm:$0x1] %vm824_vm2, %v1018_v8 }
 0x8e8   :  { %1030 = shalt.err (!%p1027_p4)
}
 0x8e9   :  { %s1031_s18 = scalar_lea.hbm %s1229_s13, 16 }
 0x8ea   :  { %p1032_p5 = scmp.ne.s32.totalorder %s1229_s13, %s1031_s18  ;;  %p1035_p6 = scmp.lt.u32.totalorder %s1031_s18, %s1229_s13 }
 0x8ec   :  { %p1037_p7 = pnand %p1035_p6, %p1032_p5 }
 0x8ee   :  { %1040 = shalt.err (!%p1037_p7)
}
 0x8ef   :  { %835 = dma.vmem_to_hbm [thread:$0]  %s833_s12, 16, %s1229_s13, [#allocation3]  }
 0x8f0   :  { %1041 = dma.done.wait [#allocation3], 16  }
 0x8f1   :  { %1042 = vsyncadd [#allocation3], 4294967280 }
 0x8f2   :  { %839 = vsyncpa [#allocation3], 1 }

</bundles_post_ra>
